<compile_context>
chip_gen: v5e
topology: v5e:2x2
jax: 0.10.0
libtpu: 0.0.40
codegen_flags: <defaults>
</compile_context>

<pallas_src>
import functools
import math

import jax
import jax.numpy as jnp
import numpy as np
from jax.experimental import pallas as pl
from jax.experimental.pallas import tpu as pltpu


# --------------------------------------------------------------------------- kernel
def _pos_enc_kernel(x_ref, o_ref, *, num_octaves, base_mult):
    """Positional encoding of one tile; channel axis is axis 1 for both layouts.

    channels-first: x_ref (1, D, TN)  -> o_ref (1, 2*D*O, TN)   (lanes = TN)
    channels-last : x_ref (TN, D)     -> o_ref (TN, 2*D*O)      (lanes = channels)
    """
    x = x_ref[...].astype(jnp.float32)
    d_in = x.shape[1]

    # Base octave only: the single pair of transcendental evaluations.
    s = jnp.sin(x * base_mult)
    c = jnp.cos(x * base_mult)
    sin_oct = [s]
    cos_oct = [c]
    # Higher octaves via double-angle recurrence (3-4 VALU ops per octave).
    for _ in range(num_octaves - 1):
        s, c = 2.0 * s * c, 1.0 - 2.0 * s * s   # RHS uses old (s, c)
        sin_oct.append(s)
        cos_oct.append(c)

    # Assemble the exact reference channel order:
    #   [sin(d0,o0..oO-1), sin(d1,..), ..., cos(d0,o0..), ...]
    # One concatenate + ONE full-block store (no masked per-channel stores).
    pieces = [sin_oct[o][:, d:d + 1] for d in range(d_in) for o in range(num_octaves)]
    pieces += [cos_oct[o][:, d:d + 1] for d in range(d_in) for o in range(num_octaves)]
    o_ref[...] = jnp.concatenate(pieces, axis=1).astype(o_ref.dtype)


# --------------------------------------------------------------------------- helpers
def _round_up(x, m):
    return (x + m - 1) // m * m


def _pick_block(n, target, align):
    """Largest divisor of n that is a multiple of `align` and <= `target`.

    `n` must already be a multiple of `align`; `target` is a power-of-two
    multiple of `align`.  Forces >= 2 grid steps when possible (v7x megacore).
    """
    blk = math.gcd(n, target)
    if n // blk < 2 and blk >= 2 * align:
        blk //= 2
    return blk


def _vmem_limit(in_block_bytes, out_block_bytes):
    # double-buffered in/out + intermediates headroom; keep under v7x physical.
    want = 6 * (in_block_bytes + out_block_bytes)
    return int(min(64 * 1024 * 1024, max(4 * 1024 * 1024, want)))


# --------------------------------------------------------------------------- wrappers
def _pos_enc_channels_first(x, *, num_octaves, start_octave, out_dtype):
    """x: (B, D, N) -> (B, 2*D*num_octaves, N), spatial axis lane-dense."""
    B, D, N = x.shape
    C = 2 * D * num_octaves
    n_pad = _round_up(N, 128)
    if n_pad != N:
        x = jnp.pad(x, ((0, 0), (0, 0), (0, n_pad - N)))
    blk = _pick_block(n_pad, 2048, 128)
    grid = (B, n_pad // blk)

    kernel = functools.partial(
        _pos_enc_kernel,
        num_octaves=num_octaves,
        base_mult=float(2.0 ** start_octave) * math.pi,
    )
    in_bytes = D * blk * np.dtype(x.dtype).itemsize
    out_bytes = C * blk * np.dtype(out_dtype).itemsize

    enc = pl.pallas_call(
        kernel,
        out_shape=jax.ShapeDtypeStruct((B, C, n_pad), out_dtype),
        grid=grid,
        in_specs=[pl.BlockSpec((1, D, blk), lambda b, i: (b, 0, i))],
        out_specs=pl.BlockSpec((1, C, blk), lambda b, i: (b, 0, i)),
        compiler_params=pltpu.CompilerParams(
            dimension_semantics=("parallel", "parallel"),
            vmem_limit_bytes=_vmem_limit(in_bytes, out_bytes)),
    )(x)
    return enc[:, :, :N] if n_pad != N else enc


def _pos_enc_channels_last(x2d, *, num_octaves, start_octave, out_dtype):
    """x2d: (N, D) -> (N, 2*D*num_octaves), channels-last (no output transpose)."""
    N, D = x2d.shape
    C = 2 * D * num_octaves
    n_pad = _round_up(N, 8)
    if n_pad != N:
        x2d = jnp.pad(x2d, ((0, n_pad - N), (0, 0)))
    blk = _pick_block(n_pad, 1024, 8)
    grid = (n_pad // blk,)

    kernel = functools.partial(
        _pos_enc_kernel,
        num_octaves=num_octaves,
        base_mult=float(2.0 ** start_octave) * math.pi,
    )
    in_bytes = blk * D * np.dtype(x2d.dtype).itemsize
    out_bytes = blk * C * np.dtype(out_dtype).itemsize

    enc = pl.pallas_call(
        kernel,
        out_shape=jax.ShapeDtypeStruct((n_pad, C), out_dtype),
        grid=grid,
        in_specs=[pl.BlockSpec((blk, D), lambda i: (i, 0))],
        out_specs=pl.BlockSpec((blk, C), lambda i: (i, 0)),
        compiler_params=pltpu.CompilerParams(
            dimension_semantics=("parallel",),
            vmem_limit_bytes=_vmem_limit(in_bytes, out_bytes)),
    )(x2d)
    return enc[:N] if n_pad != N else enc


def ray_only_encoder_forward(rays, *, ray_octaves=4, ray_start_octave=0):
    """JAX/Pallas equivalent of RayOnlyEncoder(ray_octaves, ray_start_octave)(rays)."""
    out_dtype = rays.dtype
    C = 2 * rays.shape[-1] * ray_octaves
    if rays.ndim == 4:
        B, H, W, D = rays.shape
        # layout plumbing only (input-sized; output is 2*O times larger).
        x = jnp.transpose(rays, (0, 3, 1, 2)).reshape(B, D, H * W)
        enc = _pos_enc_channels_first(
            x, num_octaves=ray_octaves, start_octave=ray_start_octave,
            out_dtype=out_dtype)                              # (B, C, H*W)
        return enc.reshape(B, C, H, W)
    # generic channels-last branch
    lead = rays.shape[:-1]
    D = rays.shape[-1]
    N = int(np.prod(lead)) if lead else 1
    enc = _pos_enc_channels_last(
        rays.reshape(N, D), num_octaves=ray_octaves,
        start_octave=ray_start_octave, out_dtype=out_dtype)   # (N, C)
    return enc.reshape(*lead, C)


# --------------------------------------------------------------------------- reference
def ray_only_encoder_reference(rays, *, ray_octaves=4, ray_start_octave=0):
    octaves = jnp.arange(ray_start_octave, ray_start_octave + ray_octaves,
                         dtype=jnp.float32)
    mults = (2.0 ** octaves) * math.pi

    def pos_enc(coords):
        shape = coords.shape[:-1]
        dim = coords.shape[-1]
        scaled = coords[..., None] * mults                    # (..., dim, O)
        sines = jnp.sin(scaled).reshape(*shape, dim * ray_octaves)
        cosines = jnp.cos(scaled).reshape(*shape, dim * ray_octaves)
        return jnp.concatenate([sines, cosines], axis=-1)

    if rays.ndim == 4:
        B, H, W, D = rays.shape
        enc = pos_enc(rays.reshape(B, H * W, D)).reshape(B, H, W, -1)
        return jnp.transpose(enc, (0, 3, 1, 2))
    return pos_enc(rays)


# --------------------------------------------------------------------------- main
if __name__ == "__main__":
    # RayOnlyEncoder(ray_octaves=4, ray_start_octave=0) on (B, H, W, 3) rays
    B, H, W, D = 2, 16, 16, 3
    O = 4
    key = jax.random.PRNGKey(0)
    k4, k3 = jax.random.split(key)

    rays4 = jax.random.uniform(k4, (B, H, W, D), jnp.float32, -1.0, 1.0)
    out4 = jax.block_until_ready(ray_only_encoder_forward(rays4, ray_octaves=O))
    ref4 = ray_only_encoder_reference(rays4, ray_octaves=O)
    assert out4.shape == (B, 2 * D * O, H, W)
    assert out4.dtype == rays4.dtype
    np.testing.assert_allclose(np.asarray(out4), np.asarray(ref4), rtol=1e-3, atol=1e-3)

    # non-4D branch (channels-last output), dedicated channels-last kernel
    rays3 = jax.random.uniform(k3, (B, 8, D), jnp.float32, -1.0, 1.0)
    out3 = jax.block_until_ready(ray_only_encoder_forward(rays3, ray_octaves=O))
    ref3 = ray_only_encoder_reference(rays3, ray_octaves=O)
    assert out3.shape == (B, 8, 2 * D * O)
    np.testing.assert_allclose(np.asarray(out3), np.asarray(ref3), rtol=1e-3, atol=1e-3)

    print("KERNEL_OK")
</pallas_src>

<mosaic_0001>
module attributes {stable_mosaic.version = 11 : i64} {
  func.func @_pos_enc_kernel(%arg0: i32, %arg1: i32, %arg2: memref<1x3x128xf32, #tpu.memory_space<vmem>>, %arg3: memref<1x24x128xf32, #tpu.memory_space<vmem>>) attributes {dimension_semantics = [#tpu.dimension_semantics<parallel>, #tpu.dimension_semantics<parallel>], iteration_bounds = array<i64: 2, 2>, scalar_prefetch = 0 : i64, scratch_operands = 0 : i64, tpu.core_type = #tpu.core_type<tc>, window_params = [{transform_indices = @transform_0, window_bounds = array<i64: 1, 3, 128>}, {transform_indices = @transform_1, window_bounds = array<i64: 1, 24, 128>}]} {
    %c0 = arith.constant 0 : index
    %c0_0 = arith.constant 0 : index
    %c0_1 = arith.constant 0 : index
    %0 = vector.load %arg2[%c0, %c0_0, %c0_1] : memref<1x3x128xf32, #tpu.memory_space<vmem>>, vector<1x3x128xf32>
    %cst = arith.constant 3.14159274 : f32
    %1 = vector.broadcast %cst : f32 to vector<1x3x128xf32>
    %2 = arith.mulf %0, %1 : vector<1x3x128xf32>
    %3 = math.sin %2 : vector<1x3x128xf32>
    %cst_2 = arith.constant 3.14159274 : f32
    %4 = vector.broadcast %cst_2 : f32 to vector<1x3x128xf32>
    %5 = arith.mulf %0, %4 : vector<1x3x128xf32>
    %6 = math.cos %5 : vector<1x3x128xf32>
    %cst_3 = arith.constant 2.000000e+00 : f32
    %7 = vector.broadcast %cst_3 : f32 to vector<1x3x128xf32>
    %8 = arith.mulf %7, %3 : vector<1x3x128xf32>
    %9 = arith.mulf %8, %6 : vector<1x3x128xf32>
    %cst_4 = arith.constant 2.000000e+00 : f32
    %10 = vector.broadcast %cst_4 : f32 to vector<1x3x128xf32>
    %11 = arith.mulf %10, %3 : vector<1x3x128xf32>
    %12 = arith.mulf %11, %3 : vector<1x3x128xf32>
    %cst_5 = arith.constant 1.000000e+00 : f32
    %13 = vector.broadcast %cst_5 : f32 to vector<1x3x128xf32>
    %14 = arith.subf %13, %12 : vector<1x3x128xf32>
    %cst_6 = arith.constant 2.000000e+00 : f32
    %15 = vector.broadcast %cst_6 : f32 to vector<1x3x128xf32>
    %16 = arith.mulf %15, %9 : vector<1x3x128xf32>
    %17 = arith.mulf %16, %14 : vector<1x3x128xf32>
    %cst_7 = arith.constant 2.000000e+00 : f32
    %18 = vector.broadcast %cst_7 : f32 to vector<1x3x128xf32>
    %19 = arith.mulf %18, %9 : vector<1x3x128xf32>
    %20 = arith.mulf %19, %9 : vector<1x3x128xf32>
    %cst_8 = arith.constant 1.000000e+00 : f32
    %21 = vector.broadcast %cst_8 : f32 to vector<1x3x128xf32>
    %22 = arith.subf %21, %20 : vector<1x3x128xf32>
    %cst_9 = arith.constant 2.000000e+00 : f32
    %23 = vector.broadcast %cst_9 : f32 to vector<1x3x128xf32>
    %24 = arith.mulf %23, %17 : vector<1x3x128xf32>
    %25 = arith.mulf %24, %22 : vector<1x3x128xf32>
    %cst_10 = arith.constant 2.000000e+00 : f32
    %26 = vector.broadcast %cst_10 : f32 to vector<1x3x128xf32>
    %27 = arith.mulf %26, %17 : vector<1x3x128xf32>
    %28 = arith.mulf %27, %17 : vector<1x3x128xf32>
    %cst_11 = arith.constant 1.000000e+00 : f32
    %29 = vector.broadcast %cst_11 : f32 to vector<1x3x128xf32>
    %30 = arith.subf %29, %28 : vector<1x3x128xf32>
    %31 = vector.extract_strided_slice %3 {offsets = [0, 0, 0], sizes = [1, 1, 128], strides = [1, 1, 1]} : vector<1x3x128xf32> to vector<1x1x128xf32>
    %32 = vector.extract_strided_slice %9 {offsets = [0, 0, 0], sizes = [1, 1, 128], strides = [1, 1, 1]} : vector<1x3x128xf32> to vector<1x1x128xf32>
    %33 = vector.extract_strided_slice %17 {offsets = [0, 0, 0], sizes = [1, 1, 128], strides = [1, 1, 1]} : vector<1x3x128xf32> to vector<1x1x128xf32>
    %34 = vector.extract_strided_slice %25 {offsets = [0, 0, 0], sizes = [1, 1, 128], strides = [1, 1, 1]} : vector<1x3x128xf32> to vector<1x1x128xf32>
    %35 = vector.extract_strided_slice %3 {offsets = [0, 1, 0], sizes = [1, 1, 128], strides = [1, 1, 1]} : vector<1x3x128xf32> to vector<1x1x128xf32>
    %36 = vector.extract_strided_slice %9 {offsets = [0, 1, 0], sizes = [1, 1, 128], strides = [1, 1, 1]} : vector<1x3x128xf32> to vector<1x1x128xf32>
    %37 = vector.extract_strided_slice %17 {offsets = [0, 1, 0], sizes = [1, 1, 128], strides = [1, 1, 1]} : vector<1x3x128xf32> to vector<1x1x128xf32>
    %38 = vector.extract_strided_slice %25 {offsets = [0, 1, 0], sizes = [1, 1, 128], strides = [1, 1, 1]} : vector<1x3x128xf32> to vector<1x1x128xf32>
    %39 = vector.extract_strided_slice %3 {offsets = [0, 2, 0], sizes = [1, 1, 128], strides = [1, 1, 1]} : vector<1x3x128xf32> to vector<1x1x128xf32>
    %40 = vector.extract_strided_slice %9 {offsets = [0, 2, 0], sizes = [1, 1, 128], strides = [1, 1, 1]} : vector<1x3x128xf32> to vector<1x1x128xf32>
    %41 = vector.extract_strided_slice %17 {offsets = [0, 2, 0], sizes = [1, 1, 128], strides = [1, 1, 1]} : vector<1x3x128xf32> to vector<1x1x128xf32>
    %42 = vector.extract_strided_slice %25 {offsets = [0, 2, 0], sizes = [1, 1, 128], strides = [1, 1, 1]} : vector<1x3x128xf32> to vector<1x1x128xf32>
    %43 = vector.extract_strided_slice %6 {offsets = [0, 0, 0], sizes = [1, 1, 128], strides = [1, 1, 1]} : vector<1x3x128xf32> to vector<1x1x128xf32>
    %44 = vector.extract_strided_slice %14 {offsets = [0, 0, 0], sizes = [1, 1, 128], strides = [1, 1, 1]} : vector<1x3x128xf32> to vector<1x1x128xf32>
    %45 = vector.extract_strided_slice %22 {offsets = [0, 0, 0], sizes = [1, 1, 128], strides = [1, 1, 1]} : vector<1x3x128xf32> to vector<1x1x128xf32>
    %46 = vector.extract_strided_slice %30 {offsets = [0, 0, 0], sizes = [1, 1, 128], strides = [1, 1, 1]} : vector<1x3x128xf32> to vector<1x1x128xf32>
    %47 = vector.extract_strided_slice %6 {offsets = [0, 1, 0], sizes = [1, 1, 128], strides = [1, 1, 1]} : vector<1x3x128xf32> to vector<1x1x128xf32>
    %48 = vector.extract_strided_slice %14 {offsets = [0, 1, 0], sizes = [1, 1, 128], strides = [1, 1, 1]} : vector<1x3x128xf32> to vector<1x1x128xf32>
    %49 = vector.extract_strided_slice %22 {offsets = [0, 1, 0], sizes = [1, 1, 128], strides = [1, 1, 1]} : vector<1x3x128xf32> to vector<1x1x128xf32>
    %50 = vector.extract_strided_slice %30 {offsets = [0, 1, 0], sizes = [1, 1, 128], strides = [1, 1, 1]} : vector<1x3x128xf32> to vector<1x1x128xf32>
    %51 = vector.extract_strided_slice %6 {offsets = [0, 2, 0], sizes = [1, 1, 128], strides = [1, 1, 1]} : vector<1x3x128xf32> to vector<1x1x128xf32>
    %52 = vector.extract_strided_slice %14 {offsets = [0, 2, 0], sizes = [1, 1, 128], strides = [1, 1, 1]} : vector<1x3x128xf32> to vector<1x1x128xf32>
    %53 = vector.extract_strided_slice %22 {offsets = [0, 2, 0], sizes = [1, 1, 128], strides = [1, 1, 1]} : vector<1x3x128xf32> to vector<1x1x128xf32>
    %54 = vector.extract_strided_slice %30 {offsets = [0, 2, 0], sizes = [1, 1, 128], strides = [1, 1, 1]} : vector<1x3x128xf32> to vector<1x1x128xf32>
    %55 = tpu.concatenate %31, %32, %33, %34, %35, %36, %37, %38, %39, %40, %41, %42, %43, %44, %45, %46 in 1 : vector<1x1x128xf32>, vector<1x1x128xf32>, vector<1x1x128xf32>, vector<1x1x128xf32>, vector<1x1x128xf32>, vector<1x1x128xf32>, vector<1x1x128xf32>, vector<1x1x128xf32>, vector<1x1x128xf32>, vector<1x1x128xf32>, vector<1x1x128xf32>, vector<1x1x128xf32>, vector<1x1x128xf32>, vector<1x1x128xf32>, vector<1x1x128xf32>, vector<1x1x128xf32> -> vector<1x16x128xf32>
    %56 = tpu.concatenate %47, %48, %49, %50, %51, %52, %53, %54 in 1 : vector<1x1x128xf32>, vector<1x1x128xf32>, vector<1x1x128xf32>, vector<1x1x128xf32>, vector<1x1x128xf32>, vector<1x1x128xf32>, vector<1x1x128xf32>, vector<1x1x128xf32> -> vector<1x8x128xf32>
    %57 = tpu.concatenate %55, %56 in 1 : vector<1x16x128xf32>, vector<1x8x128xf32> -> vector<1x24x128xf32>
    %c0_12 = arith.constant 0 : index
    %c0_13 = arith.constant 0 : index
    %c0_14 = arith.constant 0 : index
    %58 = vector.load %arg3[%c0_12, %c0_13, %c0_14] : memref<1x24x128xf32, #tpu.memory_space<vmem>>, vector<1x24x128xf32>
    tpu.vector_store %arg3[%c0_12, %c0_13, %c0_14], %57 {strides = array<i32>} : memref<1x24x128xf32, #tpu.memory_space<vmem>>, vector<1x24x128xf32>,
    return
  }
  func.func @transform_0(%arg0: i32, %arg1: i32) -> (i32, i32, i32) {
    %c0_i32 = arith.constant 0 : i32
    %c0_i32_0 = arith.constant 0 : i32
    return %arg0, %c0_i32, %arg1 : i32, i32, i32
  }
  func.func @transform_1(%arg0: i32, %arg1: i32) -> (i32, i32, i32) {
    %c0_i32 = arith.constant 0 : i32
    %c0_i32_0 = arith.constant 0 : i32
    return %arg0, %c0_i32, %arg1 : i32, i32, i32
  }
}

</mosaic_0001>

<bundles_post_ra>
// kernel: tpu_custom_call.1
= control target key start
LH: loop header
LB: loop body
LE: loop exit
PB: predicated region body
PF: predicated region fallthrough
CT: control target
= control target key end

     0   :  { %6 = vsyncpa [#allocation3], 0  ;;  %s1068_s0 = inlined_call_operand.vmem [shape: f32[2,3,256], index: 0, kind: input, shape index: {}]   ;;  %s1069_s1 = inlined_call_operand.hbm [shape: f32[2,24,256], index: 1, kind: output, shape index: {}]  }
   0x1   :  { %8 = vsyncpa [#allocation3 + $0x1], 0  ;;  %s857_s6 = smov 0   ;;  %s859_s7 = smov 0  }
   0x2   :  { %s861_s8 = smov 0   ;;  %s863_s9 = smov 0  }
   0x3   :  { %s865_s10 = smov 0   ;;  %s867_s11 = smov 0  }
   0x4   :  { %s869_s12 = smov 0   ;;  %s871_s13 = smov 0  }
   0x5 LB: > { %s642_s14 = sadd.s32 4294967295, %s835_s13   ;;  %s643_s15 = sadd.s32 4294967294, %s835_s13   ;;  %s835_s13 = sphi %s871_s13, %s14_s13   ;;  %s831_s12 = sphi %s869_s12, %s1078_s12   ;;  %s827_s11 = sphi %s867_s11, %s1077_s11   ;;  %s823_s10 = sphi %s865_s10, %s1076_s10   ;;  %s819_s9 = sphi %s863_s9, %s1075_s9   ;;  %s815_s8 = sphi %s861_s8, %s1074_s8   ;;  %s811_s7 = sphi %s859_s7, %s1073_s7   ;;  %s807_s6 = sphi %s857_s6, %s1072_s6  }
   0x6   : > { %s23_s16 = sadd.s32 1, %s827_s11  ;;  %s26_s17 = sadd.s32 1, %s831_s12 }
   0x7   : > { %p24_p0 = scmp.ge.s32.totalorder %s23_s16, 2  ;;  %p73_p1 = scmp.ne.s32.totalorder %s815_s8, %s811_s7 }
   0x8   : > { %p74_p2 = scmp.eq.s32.totalorder %s642_s14, 3  ;;  %p79_p5 = scmp.ne.s32.totalorder %s811_s7, %s807_s6 }
   0x9   : > { %s1080_s16 = smov (%p24_p0, %s23_s16), 0  ;;  %s1082_s17 = smov (!%p24_p0, %s26_s17), %s831_s12 }
   0xa   : > { %s59_s18 = ssub.s32 %s827_s11, %s1080_s16  ;;  %p908_p3 = por %p74_p2, %p73_p1 }
   0xb   : > { %p28_p4 = scmp.ge.s32.totalorder %s1082_s17, 2  ;;  %p80_p6 = scmp.eq.s32.totalorder %s643_s15, 3 }
   0xc   : > { %p646_p7 = scmp.ge.s32.totalorder %s835_s13, 1  ;;  %p109_p9 = scmp.lt.s32.totalorder %s835_s13, 5 }
   0xd   : > { %s1084_s17 = smov (%p28_p4, %s1082_s17), 0  ;;  %p917_p8 = por %p80_p6, %p79_p5 }
   0xe   : > { %s58_s21 = ssub.s32 %s831_s12, %s1084_s17  ;;  %s63_s22 = sadd.s32 1, %s815_s8 }
   0xf   : > { %s60_s23 = sor.u32 %s59_s18, %s58_s21  ;;  %p110_p10 = pnand %p646_p7, %p109_p9 }
  0x10   : > { %p61_p11 = scmp.eq.s32.totalorder %s60_s23, 0  ;;  %p132_p12 = scmp.lt.s32.totalorder (!%p110_p10), %s823_s10, 1 }
  0x11   : > { %113 = sbr.rel (%p110_p10) target bundleno = 153 (0x99), region = 24  ;;  %p134_p13 = scmp.lt.s32.totalorder (!%p110_p10), %s819_s9, 1 }
  0x12   : > { %s926_s24 = scalar_select %p61_p11, %s815_s8, %s63_s22  }
  0x13   : > { %s659_s4 = smul.u32 (!%p110_p10), 6, %s823_s10  ;;  %s129_s5 = sand.u32 (!%p110_p10), 1, %s811_s7  }
  0x14   : > { %s992_s14 = smul.u32 (!%p110_p10), 24, %s129_s5  ;;  %s761_s2 = scalar_lea.hbm (!%p110_p10), %s1069_s1, 96 }
  0x16   : > { %s133_s25 = scalar_select %p132_p12, %s823_s10, 1  ;;  %v837_v13 = vmov 683565275   ;;  %v838_v15 = vmov 2475754826  }
  0x17   : > { %s135_s26 = scalar_select %p134_p13, %s819_s9, 1  ;;  %v839_v17 = vmov 2131351028   ;;  %v840_v19 = vmov 2102212464  }
  0x18   : > { %s647_s27 = sshll.u32 %s133_s25, 1  ;;  %v841_v21 = vmov 920167782   ;;  %v842_v27 = vmov 1326507024   ;;  %s555_s10 = sadd.s32 %s819_s9, %s659_s4 }
  0x19   : > { %s137_s28 = sadd.s32 %s647_s27, %s135_s26  ;;  %s655_s15 = sshll.u32 %s555_s10, 3 }
  0x1a   : > { %s648_s29 = sshll.u32 %s137_s28, 2  ;;  %s557_s21 = scalar_lea.hbm %s1069_s1, %s655_s15 }
  0x1b   : > { %s139_s3 = scalar_lea.vmem %s1068_s0, %s648_s29  ;;  %s131_s22 = scalar_lea.vmem [#allocation2], %s992_s14 }
  0x1c   : > { %v140_v0 = vld [vmem:[%s139_s3] sm:$0x7]  ;;  %s558_s23 = sshll.u32 %s131_s22, 4  ;;  %s560_s25 = sshll.u32 %s557_s21, 4  ;;  %s1018_s23 = int_to_ptr.vmem [resolvable:$true] %s558_s23  ;;  %s561_s25 = int_to_ptr.hbm [resolvable:$true] %s560_s25 }
  0x1d   : > { %v935_v1 = vmul.f32 3.1415927, %v140_v0  ;;  %s545_s26 = scalar_lea.sflag [#allocation3], %s129_s5  ;;  %s755_s27 = sshra.s32 %s561_s25, 4  ;;  %s756_s27 = int_to_ptr.hbm [resolvable:$true] %s755_s27 }
  0x1e   : > { %s757_s28 = scalar_lea.hbm %s756_s27, 24  ;;  %p762_p4 = scmp.lt.s32.totalorder %s756_s27, %s1069_s1 }
  0x1f   : > { %v145_v2 = vand.u32 2139095040, %v935_v1  ;;  %v142_v4 = vand.u32 2147483647, %v935_v1  ;;  %vm144_vm12 = vcmp.lt.s32.totalorder %v935_v1, 0  ;;  %p758_p0 = scmp.ne.s32.totalorder %s756_s27, %s757_s28  ;;  %p763_p5 = scmp.lt.s32.totalorder %s761_s2, %s757_s28 }
  0x21   : > { %v146_v3 = vshrl.u32 %v145_v2, 23  ;;  %v149_v7 = vand.u32 8388607, %v142_v4  ;;  %v843_v2 = vmov 0   ;;  %vm143_vm13 = vcmp.le.f32.partialorder %v142_v4, 0.7853982  ;;  %p759_p1 = pnand %p758_p0, %p908_p3  ;;  %p764_p6 = por %p763_p5, %p762_p4 }
  0x23   : > { %v649_v5 = vadd.s32 4294967169, %v146_v3  ;;  %v150_v10 = vor.u32 8388608, %v149_v7  ;;  %p760_p2 = pneg %p759_p1 }
  0x25   : > { %v152_v6 = vadd.s32 1, %v649_v5  ;;  %v944_v29 = vshll.u32 %v150_v10, 8  ;;  %p765_p7 = pnand %p764_p6, %p760_p2 }
  0x27   : > { %vm153_vm0 = vcmp.gt.s32.totalorder %v152_v6, 0  ;;  %v191_v41 = vand.u32 65535, %v944_v29  ;;  %v192_v42 = vshrl.u32 %v944_v29, 16 }
  0x28   : > { %v154_v8 = vsel %vm153_vm0, %v152_v6, 0 }
  0x29   : > { %v156_v9 = vand.u32 31, %v154_v8  ;;  %v941_v11 = vshrl.u32 %v154_v8, 5 }
  0x2b   : > { %v157_v12 = vsub.s32 32, %v156_v9  ;;  %v159_v14 = vshll.u32 %v837_v13, %v156_v9  ;;  %v162_v16 = vshll.u32 %v838_v15, %v156_v9  ;;  %v165_v18 = vshll.u32 %v839_v17, %v156_v9 }
  0x2c   : > { %v168_v20 = vshll.u32 %v840_v19, %v156_v9  ;;  %v171_v22 = vshll.u32 %v841_v21, %v156_v9  ;;  %vm174_vm1 = vcmp.lt.s32.totalorder %v941_v11, 1  ;;  %vm177_vm2 = vcmp.lt.s32.totalorder %v941_v11, 4 }
  0x2d   : > { %v160_v23 = vshrl.u32 %v838_v15, %v157_v12  ;;  %v163_v24 = vshrl.u32 %v839_v17, %v157_v12  ;;  %v166_v25 = vshrl.u32 %v840_v19, %v157_v12  ;;  %v169_v26 = vshrl.u32 %v841_v21, %v157_v12 }
  0x2e   : > { %v172_v28 = vshrl.u32 %v842_v27, %v157_v12  ;;  %vm176_vm3 = vcmp.lt.s32.totalorder %v941_v11, 3  ;;  %vm175_vm4 = vcmp.lt.s32.totalorder %v941_v11, 2  ;;  %v158_v49 = vshrl.u32 %v837_v13, %v157_v12 }
  0x2f   : > { %v161_v30 = vor.u32 %v160_v23, %v159_v14  ;;  %v164_v31 = vor.u32 %v163_v24, %v162_v16  ;;  %v167_v32 = vor.u32 %v166_v25, %v165_v18  ;;  %v170_v33 = vor.u32 %v169_v26, %v168_v20 }
  0x30   : > { %v173_v34 = vor.u32 %v172_v28, %v171_v22 }
  0x31   : > { %v182_v35 = vsel %vm174_vm1, %v161_v30, %v164_v31  ;;  %v186_v36 = vsel %vm174_vm1, %v164_v31, %v167_v32  ;;  %v183_v37 = vsel %vm177_vm2, %v170_v33, 920167782  ;;  %v178_v62 = vsel %vm174_vm1, %v158_v49, %v161_v30 }
  0x32   : > { %v187_v38 = vsel %vm177_vm2, %v173_v34, 1326507024  ;;  %v184_v39 = vsel %vm176_vm3, %v167_v32, %v183_v37  ;;  %v179_v0 = vsel %vm177_vm2, %v167_v32, 2102212464 }
  0x33   : > { %v188_v40 = vsel %vm176_vm3, %v170_v33, %v187_v38  ;;  %v185_v43 = vsel %vm175_vm4, %v182_v35, %v184_v39  ;;  %v180_v13 = vsel %vm176_vm3, %v164_v31, %v179_v0 }
  0x34   : > { %v189_v44 = vsel %vm175_vm4, %v186_v36, %v188_v40  ;;  %v215_v47 = vand.u32 65535, %v185_v43  ;;  %v216_v48 = vshrl.u32 %v185_v43, 16  ;;  %v181_v21 = vsel %vm175_vm4, %v178_v62, %v180_v13 }
  0x35   : > { %v193_v45 = vand.u32 65535, %v189_v44  ;;  %v194_v46 = vshrl.u32 %v189_v44, 16  ;;  %v235_v25 = vmul.u32 %v944_v29, %v181_v21  ;;  %vm285_vm4 = vweird.f32 %v935_v1 }
  0x36   : > { %v217_v53 = vmul.u32 %v215_v47, %v191_v41  ;;  %v218_v54 = vmul.u32 %v216_v48, %v191_v41  ;;  %v219_v55 = vmul.u32 %v215_v47, %v192_v42  ;;  %v220_v59 = vmul.u32 %v216_v48, %v192_v42 }
  0x37   : > { %v195_v50 = vmul.u32 %v193_v45, %v191_v41  ;;  %v196_v51 = vmul.u32 %v194_v46, %v191_v41  ;;  %v197_v52 = vmul.u32 %v193_v45, %v192_v42  ;;  %v198_v56 = vmul.u32 %v194_v46, %v192_v42 }
  0x38   : > { %v221_v60 = vshll.u32 %v218_v54, 16  ;;  %v223_v61 = vshll.u32 %v219_v55, 16  ;;  %v222_v10 = vshrl.u32 %v218_v54, 16  ;;  %v224_v17 = vshrl.u32 %v219_v55, 16 }
  0x39   : > { %v199_v57 = vshll.u32 %v196_v51, 16  ;;  %v201_v58 = vshll.u32 %v197_v52, 16  ;;  %v200_v6 = vshrl.u32 %v196_v51, 16  ;;  %v202_v14 = vshrl.u32 %v197_v52, 16 }
  0x3a   : > { %vm225_vm6 = vc.u32 %v217_v53, %v221_v60  ;;  %v227_v5 = vadd.s32 %v221_v60, %v217_v53 }
  0x3b   : > { %vm203_vm5 = vc.u32 %v195_v50, %v199_v57  ;;  %v205_v63 = vadd.s32 %v199_v57, %v195_v50  ;;  %v226_v8 = vsel %vm225_vm6, 1, %v843_v2  ;;  %vm501_vm6 = vcmask 1041408  }
  0x3c   : > { %v204_v3 = vsel %vm203_vm5, 1, %v843_v2  ;;  %v228_v12 = vadd.s32 %v226_v8, %v220_v59  ;;  %vm229_vm8 = vc.u32 %v227_v5, %v223_v61  ;;  %v231_v20 = vadd.s32 %v227_v5, %v223_v61 }
  0x3d   : > { %v206_v7 = vadd.s32 %v204_v3, %v198_v56  ;;  %vm207_vm7 = vc.u32 %v205_v63, %v201_v58  ;;  %v230_v16 = vsel %vm229_vm8, 1, %v843_v2  ;;  %vm499_vm5 = vcmask 1040384  }
  0x3e   : > { %v208_v9 = vsel %vm207_vm7, 1, %v843_v2  ;;  %v232_v18 = vadd.s32 %v230_v16, %v228_v12  ;;  %vm503_vm7 = vcmask 1042432   ;;  %vm505_vm8 = vcmask 1043456  }
  0x3f   : > { %v210_v15 = vadd.s32 %v208_v9, %v206_v7 }
  0x40   : > { %v233_v22 = vadd.s32 %v232_v18, %v222_v10 }
  0x41   : > { %v211_v19 = vadd.s32 %v210_v15, %v200_v6 }
  0x42   : > { %v234_v24 = vadd.s32 %v233_v22, %v224_v17 }
  0x43   : > { %v212_v23 = vadd.s32 %v211_v19, %v202_v14 }
  0x44   : > { %v238_v26 = vadd.s32 1, %v234_v24 }
  0x45   : > { %vm237_vm9 = vc.u32 %v212_v23, %v231_v20  ;;  %v236_v11 = vadd.s32 %v231_v20, %v212_v23 }
  0x46   : > { %v239_v27 = vsel %vm237_vm9, %v238_v26, %v234_v24  ;;  %vm507_vm9 = vcmask 1044480  }
  0x47   : > { %v240_v28 = vadd.s32 %v239_v27, %v235_v25 }
  0x49   : > { %v241_v30 = vadd.s32 536870912, %v240_v28 }
  0x4b   : > { %v242_v31 = vshrl.u32 %v241_v30, 30 }
  0x4d   : > { %v243_v32 = vshll.u32 %v242_v31, 30  ;;  %v266_v49 = vsub.s32 4, %v242_v31 }
  0x4f   : > { %v244_v33 = vsub.s32 %v240_v28, %v243_v32  ;;  %v267_v52 = vsel %vm144_vm12, %v266_v49, %v242_v31 }
  0x50   : > { %v269_v55 = vsel %vm143_vm13, 0, %v267_v52 }
  0x51   : > { %vm245_vm10 = vcmp.lt.s32.totalorder %v244_v33, 0  ;;  %v246_v34 = vsub.s32 0, %v244_v33  ;;  %v286_v60 = vadd.s32 3, %v269_v55  ;;  %v441_v3 = vand.u32 3, %v269_v55 }
  0x53   : > { %v247_v35 = vsel %vm245_vm10, %v246_v34, %v244_v33  ;;  %v287_v2 = vand.u32 3, %v286_v60  ;;  %vm446_vm15 = vcmp.eq.s32.totalorder %v441_v3, 2  ;;  %vm443_vm2 = vcmp.eq.s32.totalorder %v441_v3, 0 }
  0x54   : > { %v248_v36 = vclz %v247_v35  ;;  %vm442_vm3 = vcmp.lt.s32.totalorder %v441_v3, 2  ;;  %vm509_vm10 = vcmask 1045504  }
  0x55   : > { %vm292_vm14 = vcmp.eq.s32.totalorder %v287_v2, 2  ;;  %vm288_vm0 = vcmp.lt.s32.totalorder %v287_v2, 2  ;;  %vm289_vm1 = vcmp.eq.s32.totalorder %v287_v2, 0 }
  0x56   : > { %v650_v37 = vadd.s32 4294967294, %v248_v36 }
  0x58   : > { %vm651_vm11 = vcmp.lt.s32.totalorder %v650_v37, 0 }
  0x59   : > { %v251_v38 = vsel %vm651_vm11, 0, %v650_v37  ;;  %vm511_vm11 = vcmask 1046528  }
  0x5a   : > { %v252_v39 = vsub.s32 32, %v251_v38  ;;  %v253_v40 = vshll.u32 %v244_v33, %v251_v38  ;;  %v256_v41 = vsub.s32 4294967266, %v251_v38 }
  0x5c   : > { %v254_v29 = vshrl.u32 %v236_v11, %v252_v39  ;;  %v257_v42 = vadd.s32 127, %v256_v41 }
  0x5e   : > { %v255_v43 = vor.u32 %v254_v29, %v253_v40  ;;  %v258_v44 = vshll.u32 %v257_v42, 23 }
  0x60   : > { %v259_v45 = vor.u32 4788187, %v258_v44  ;;  %v262_v46 = vcvt.s32.f32 %v255_v43 }
  0x62   : > { %v260_v47 = vand.u32 2147483647, %v259_v45 }
  0x64   : > { %v263_v48 = vmul.f32 %v262_v46, %v260_v47 }
  0x66   : > { %v264_v50 = vxor.u32 2147483648, %v263_v48 }
  0x68   : > { %v265_v51 = vsel %vm144_vm12, %v264_v50, %v263_v48 }
  0x69   : > { %v268_v53 = vsel %vm143_vm13, %v935_v1, %v265_v51 }
  0x6a   : > { %v270_v54 = vmul.f32 %v268_v53, %v268_v53 }
  0x6c   : > { %v271_v56 = vmul.f32 -0.001358992, %v270_v54  ;;  %v278_v57 = vmul.f32 -0.00019511016, %v270_v54 }
  0x6e   : > { %v272_v58 = vadd.f32 0.041655596, %v271_v56  ;;  %v279_v59 = vadd.f32 0.008332121, %v278_v57 }
  0x70   : > { %v273_v61 = vmul.f32 %v272_v58, %v270_v54  ;;  %v280_v62 = vmul.f32 %v279_v59, %v270_v54 }
  0x72   : > { %v274_v63 = vadd.f32 -0.4999988, %v273_v61  ;;  %v281_v0 = vadd.f32 -0.16666654, %v280_v62 }
  0x74   : > { %v275_v5 = vmul.f32 %v274_v63, %v270_v54  ;;  %v282_v4 = vmul.f32 %v281_v0, %v270_v54 }
  0x76   : > { %v276_v6 = vadd.f32 1.0, %v275_v5  ;;  %v283_v7 = vadd.f32 1.0, %v282_v4 }
  0x78   : > { %v284_v8 = vmul.f32 %v283_v7, %v268_v53  ;;  %v293_v9 = vxor.u32 2147483648, %v276_v6 }
  0x7a   : > { %v290_v10 = vxor.u32 2147483648, %v284_v8  ;;  %v294_v12 = vsel %vm292_vm14, %v293_v9, %v284_v8  ;;  %v448_v13 = vsel %vm446_vm15, %v293_v9, %v284_v8 }
  0x7c   : > { %v291_v14 = vsel %vm289_vm1, %v276_v6, %v290_v10  ;;  %v445_v15 = vsel %vm443_vm2, %v276_v6, %v290_v10 }
  0x7d   : > { %v295_v16 = vsel %vm288_vm0, %v291_v14, %v294_v12  ;;  %v449_v17 = vsel %vm442_vm3, %v445_v15, %v448_v13 }
  0x7e   : > { %v296_v18 = vsel %vm285_vm4, nan, %v295_v16  ;;  %v981_v19 = vsel %vm285_vm4, nan, %v449_v17 }
  0x7f   : > { %v451_v20 = vmul.f32 2.0, %v296_v18  ;;  %v481_v25 = vrot.slane %v296_v18, 2  ;;  %v520_v30 = vrot.slane %v981_v19, 1  ;;  %v473_v36 = vrot.slane %v296_v18, 5 }
  0x80   : > { %v488_v37 = vrot.slane %v981_v19, 4  ;;  %v526_v11 = vrot.slane %v981_v19, 6 }
  0x81   : > { %v452_v21 = vmul.f32 %v451_v20, %v981_v19  ;;  %v453_v22 = vmul.f32 %v451_v20, %v296_v18 }
  0x83   : > { %v986_v23 = vsub.f32 1.0, %v453_v22  ;;  %v455_v24 = vmul.f32 2.0, %v452_v21  ;;  %v464_v1 = vrot.slane %v452_v21, 7  ;;  %v483_v26 = vrot.slane %v452_v21, 1 }
  0x84   : > { %v475_v39 = vrot.slane %v452_v21, 4 }
  0x85   : > { %v456_v27 = vmul.f32 %v455_v24, %v986_v23  ;;  %v457_v28 = vmul.f32 %v455_v24, %v452_v21  ;;  %v500_v31 = vsel %vm499_vm5, %v296_v18, %v464_v1  ;;  %v513_v35 = vsel %vm499_vm5, %v481_v25, %v483_v26 }
  0x86   : > { %v534_v41 = vsel %vm499_vm5, %v520_v30, %v986_v23  ;;  %v491_v42 = vrot.slane %v986_v23, 3  ;;  %v528_v48 = vrot.slane %v986_v23, 5 }
  0x87   : > { %v458_v32 = vsub.f32 1.0, %v457_v28  ;;  %v459_v33 = vmul.f32 2.0, %v456_v27  ;;  %v467_v34 = vrot.slane %v456_v27, 6  ;;  %v514_v43 = vsel %vm501_vm6, %v513_v35, %v456_v27 }
  0x88   : > { %v477_v49 = vrot.slane %v456_v27, 3 }
  0x89   : > { %v460_v38 = vmul.f32 %v459_v33, %v458_v32  ;;  %v461_v40 = vmul.f32 %v459_v33, %v456_v27  ;;  %v502_v29 = vsel %vm501_vm6, %v500_v31, %v467_v34  ;;  %v522_v44 = vrot.slane %v458_v32, 7 }
  0x8a   : > { %v494_v51 = vrot.slane %v458_v32, 2  ;;  %v530_v59 = vrot.slane %v458_v32, 4 }
  0x8b   : > { %v470_v45 = vrot.slane %v460_v38, 5  ;;  %v462_v46 = vsub.f32 1.0, %v461_v40  ;;  %v485_v47 = vrot.slane %v460_v38, 7  ;;  %v479_v50 = vrot.slane %v460_v38, 2 }
  0x8c   : > { %v535_v52 = vsel %vm501_vm6, %v534_v41, %v522_v44 }
  0x8d   : > { %v504_v53 = vsel %vm503_vm7, %v502_v29, %v470_v45  ;;  %v497_v54 = vrot.slane %v462_v46, 1  ;;  %v515_v55 = vsel %vm503_vm7, %v514_v43, %v485_v47  ;;  %v524_v56 = vrot.slane %v462_v46, 6 }
  0x8e   : > { %v506_v57 = vsel %vm505_vm8, %v504_v53, %v473_v36  ;;  %v516_v58 = vsel %vm505_vm8, %v515_v55, %v488_v37  ;;  %v532_v62 = vrot.slane %v462_v46, 3 }
  0x8f   : > { %v508_v60 = vsel %vm507_vm9, %v506_v57, %v475_v39  ;;  %v517_v61 = vsel %vm507_vm9, %v516_v58, %v491_v42  ;;  %v536_v63 = vsel %vm503_vm7, %v535_v52, %v524_v56 }
  0x90   : > { %v510_v0 = vsel %vm509_vm10, %v508_v60, %v477_v49  ;;  %v518_v2 = vsel %vm509_vm10, %v517_v61, %v494_v51  ;;  %v537_v3 = vsel %vm505_vm8, %v536_v63, %v526_v11 }
  0x91   : > { %v512_v5 = vsel %vm511_vm11, %v510_v0, %v479_v50  ;;  %v519_v4 = vsel %vm511_vm11, %v518_v2, %v497_v54  ;;  %v538_v6 = vsel %vm507_vm9, %v537_v3, %v528_v48 }
  0x92   : > { %541 = vst [vmem:[%s131_s22] sm:$0xff] %v512_v5  ;;  %v539_v7 = vsel %vm509_vm10, %v538_v6, %v530_v59 }
  0x93   : > { %542 = vst [vmem:[%s131_s22 + $0x8] sm:$0xff] %v519_v4  ;;  %v540_v8 = vsel %vm511_vm11, %v539_v7, %v532_v62 }
  0x94   : > { %543 = vst [vmem:[%s131_s22 + $0x10] sm:$0xff] %v540_v8 }
  0x95   : > { %768 = shalt.err (!%p765_p7)
}
  0x96   : > { %s844_s5 = smov 128   ;;  %s845_s14 = smov 256  }
  0x97   : > { %s846_s10 = smov 8  }
  0x98   : > { %660 = dma.vmem_to_hbm [thread:$0]  (%p908_p3), %s1018_s23, 384, %s561_s25, %s545_s26, %s844_s5, %s845_s14, %s846_s10  }
  0x99 PF: > { %p666_p9 = scmp.ge.s32.totalorder %s835_s13, 2  ;;  %s575_s15 = sand.u32 1, %s807_s6  }
  0x9a   : > { %s576_s9 = scalar_lea.sflag [#allocation3], %s575_s15 }
  0x9b   : > { %p663_p10 = pnand %p666_p9, %p917_p8 }
  0x9d   : > { %p664_p11 = pneg %p663_p10 }
  0x9f   : > { %802 = dma.done.wait (%p664_p11), %s576_s9, 384  }
  0xa0   : > { %804 = vsyncadd (%p664_p11), %s576_s9, 4294966912  ;;  %s14_s13 = sadd.s32 1, %s835_s13   ;;  %s1072_s6 = smov %s811_s7 }
  0xa1   : > { %p11_p12 = scmp.ge.s32.totalorder %s14_s13, 6   ;;  %s1073_s7 = smov %s815_s8 }
  0xa2   : > { %s1074_s8 = smov %s926_s24  ;;  %s1075_s9 = smov %s827_s11 }
  0xa3   : > { %s1076_s10 = smov %s831_s12  ;;  %s1077_s11 = smov %s1080_s16 }
  0xa4   : > { %s1078_s12 = smov %s1084_s17  ;;  %13 = sbr.rel (!%p11_p12) target bundleno = 5 (0x5), region = 59 }
  0xa9   :  { %582 = vsyncpa [#allocation3], 1 }
  0xaa   :  { %584 = vsyncpa [#allocation3 + $0x1], 1 }

</bundles_post_ra>
